<compile_context>
chip_gen: v7x
topology: tpu7x:2x2x1
jax: 0.10.0
libtpu: 0.0.40
codegen_flags: <defaults>
</compile_context>

<pallas_src>
import functools

import jax
import jax.numpy as jnp
from jax import lax
from jax.experimental import pallas as pl
from jax.experimental.pallas import tpu as pltpu


# ----------------------------------------------------------------------------------
# small helpers
# ----------------------------------------------------------------------------------

def _round_up(n, m):
    return (n + m - 1) // m * m


def _pick_tp(P, *, max_tp=1024, align=16, single_step_max=512):
    """Pixel-axis tile.

    * P <= 512: one full-P grid step (best MXU M-utilization, no per-step overhead).
    * P  > 512: split into >=2 "parallel" steps of >=256 rows (<= max_tp) so v7x's two
      TensorCores can shard the grid; v5e/v6e still get large well-amortized tiles.
    Tiles are multiples of 16 for bf16 sublane packing.
    """
    Pa = _round_up(max(P, align), align)
    if Pa <= single_step_max:
        return Pa
    return min(max_tp, _round_up(-(-Pa // 2), align))


def _vmem_limit(tile_bytes):
    # 2x for double-buffering, 2x slack for in-kernel temporaries; floored at the default
    # scoped budget, capped below v7x's 64 MiB/TC.
    return int(min(56 << 20, max(32 << 20, 4 * tile_bytes)))


# ----------------------------------------------------------------------------------
# Pallas kernels
# ----------------------------------------------------------------------------------

def _pw_kernel(x_ref, w_ref, b_ref, o_ref, *, relu):
    # 1x1 conv (BN scale pre-folded into w) + bias (+ ReLU).  bf16 in, f32 acc, bf16 out.
    y = jnp.dot(x_ref[...], w_ref[...], preferred_element_type=jnp.float32) + b_ref[...]
    if relu:
        y = jnp.maximum(y, 0.0)
    o_ref[...] = y.astype(o_ref.dtype)


def _pw_res_kernel(x_ref, r_ref, w_ref, b_ref, o_ref, *, relu):
    # 1x1 conv + bias + residual add (+ ReLU): the bottleneck tail, fused in one pass.
    y = (jnp.dot(x_ref[...], w_ref[...], preferred_element_type=jnp.float32)
         + b_ref[...] + r_ref[...].astype(jnp.float32))
    if relu:
        y = jnp.maximum(y, 0.0)
    o_ref[...] = y.astype(o_ref.dtype)


@functools.partial(jax.jit, static_argnames=("relu",))
def pointwise_conv_bn(x_nhwc, w, b, *, relu, res=None):
    """Fused 1x1 conv (BN-scale folded into w) + bias (+residual) (+ReLU).

    x: (N,H,W,Cin) bf16, w: (Cin,Cout) bf16, b: (1,Cout) f32, res: (N,H,W,Cout) bf16.
    Returns (N,H,W,Cout) bf16.
    """
    N, H, W, Cin = x_nhwc.shape
    Cout = w.shape[1]
    P = N * H * W
    TP = _pick_tp(P)
    Ppad = _round_up(P, TP)

    x2 = x_nhwc.reshape(P, Cin)
    if Ppad != P:
        x2 = jnp.pad(x2, ((0, Ppad - P), (0, 0)))

    operands = [x2]
    in_specs = [pl.BlockSpec((TP, Cin), lambda i: (i, 0))]
    res_tile_bytes = 0
    res_hbm_bytes = 0
    if res is not None:
        r2 = res.reshape(P, Cout)
        if Ppad != P:
            r2 = jnp.pad(r2, ((0, Ppad - P), (0, 0)))
        operands.append(r2)
        in_specs.append(pl.BlockSpec((TP, Cout), lambda i: (i, 0)))
        res_tile_bytes = TP * Cout * 2
        res_hbm_bytes = Ppad * Cout * 2

    operands += [w, b]
    in_specs += [pl.BlockSpec((Cin, Cout), lambda i: (0, 0)),
                 pl.BlockSpec((1, Cout), lambda i: (0, 0))]

    kernel = functools.partial(_pw_res_kernel if res is not None else _pw_kernel,
                               relu=relu)
    tile_bytes = (TP * Cin * 2 + res_tile_bytes + Cin * Cout * 2 + Cout * 4
                  + TP * Cout * 2)
    cost = pl.CostEstimate(
        flops=2 * Ppad * Cin * Cout,
        transcendentals=0,
        bytes_accessed=(Ppad * Cin * 2 + res_hbm_bytes + Cin * Cout * 2
                        + Cout * 4 + Ppad * Cout * 2))

    out = pl.pallas_call(
        kernel,
        out_shape=jax.ShapeDtypeStruct((Ppad, Cout), jnp.bfloat16),
        grid_spec=pltpu.PrefetchScalarGridSpec(
            num_scalar_prefetch=0,
            grid=(Ppad // TP,),
            in_specs=in_specs,
            out_specs=pl.BlockSpec((TP, Cout), lambda i: (i, 0))),
        compiler_params=pltpu.CompilerParams(
            dimension_semantics=("parallel",),
            vmem_limit_bytes=_vmem_limit(tile_bytes)),
        cost_estimate=cost,
    )(*operands)
    return out[:P].reshape(N, H, W, Cout)


def _head_kernel(fc_ref, fd_ref, w1a_ref, w1b_ref, b1_ref, w2_ref, b2_ref,
                 w3_ref, b3_ref, o_ref):
    # Fused head: conv1(cat([fc, fd], channel)) -> conv2 -> conv3 (all 1x1, NO activation
    # in between, matching the PyTorch reference).  The channel concat is avoided by
    # splitting conv1's weight rows: dot(fc, w1a) + dot(fd, w1b).
    h1 = (jnp.dot(fc_ref[...], w1a_ref[...], preferred_element_type=jnp.float32)
          + jnp.dot(fd_ref[...], w1b_ref[...], preferred_element_type=jnp.float32)
          + b1_ref[...])
    h2 = (jnp.dot(h1.astype(jnp.bfloat16), w2_ref[...],
                  preferred_element_type=jnp.float32) + b2_ref[...])
    o_ref[...] = (jnp.dot(h2.astype(jnp.bfloat16), w3_ref[...],
                          preferred_element_type=jnp.float32) + b3_ref[...])


@jax.jit
def head_forward(cf, df, w1a, w1b, b1, w2, b2, w3, b3):
    """cf, df: (N,H,W,1024) bf16.  Returns (N,H,W,NC_PAD) f32 (conv3 out, lane-padded)."""
    N, H, W, C = cf.shape
    P = N * H * W
    TP = _pick_tp(P)
    Ppad = _round_up(P, TP)
    NCP = w3.shape[1]

    fc = cf.reshape(P, C)
    fd = df.reshape(P, C)
    if Ppad != P:
        fc = jnp.pad(fc, ((0, Ppad - P), (0, 0)))
        fd = jnp.pad(fd, ((0, Ppad - P), (0, 0)))

    w_bytes = (w1a.size + w1b.size + w2.size + w3.size) * 2
    b_bytes = (b1.size + b2.size + b3.size) * 4
    tile_bytes = 2 * TP * C * 2 + w_bytes + b_bytes + TP * NCP * 4
    flops = 2 * Ppad * (2 * C * w1a.shape[1]
                        + w2.shape[0] * w2.shape[1]
                        + w3.shape[0] * w3.shape[1])
    cost = pl.CostEstimate(
        flops=flops, transcendentals=0,
        bytes_accessed=2 * Ppad * C * 2 + w_bytes + b_bytes + Ppad * NCP * 4)

    out = pl.pallas_call(
        _head_kernel,
        out_shape=jax.ShapeDtypeStruct((Ppad, NCP), jnp.float32),
        grid_spec=pltpu.PrefetchScalarGridSpec(
            num_scalar_prefetch=0,
            grid=(Ppad // TP,),
            in_specs=[
                pl.BlockSpec((TP, C), lambda i: (i, 0)),
                pl.BlockSpec((TP, C), lambda i: (i, 0)),
                pl.BlockSpec(w1a.shape, lambda i: (0, 0)),
                pl.BlockSpec(w1b.shape, lambda i: (0, 0)),
                pl.BlockSpec(b1.shape, lambda i: (0, 0)),
                pl.BlockSpec(w2.shape, lambda i: (0, 0)),
                pl.BlockSpec(b2.shape, lambda i: (0, 0)),
                pl.BlockSpec(w3.shape, lambda i: (0, 0)),
                pl.BlockSpec(b3.shape, lambda i: (0, 0)),
            ],
            out_specs=pl.BlockSpec((TP, NCP), lambda i: (i, 0))),
        compiler_params=pltpu.CompilerParams(
            dimension_semantics=("parallel",),
            vmem_limit_bytes=_vmem_limit(tile_bytes)),
        cost_estimate=cost,
    )(fc, fd, w1a, w1b, b1, w2, b2, w3, b3)
    return out[:P].reshape(N, H, W, NCP)


def _upsample2x_kernel(x_ref, o_ref):
    # Bilinear x2 on both spatial axes of a (1,H,W,C) block (align_corners=False,
    # PyTorch nn.Upsample default; separable):
    #   out[2k]   = 0.25 * x[max(k-1,0)] + 0.75 * x[k]
    #   out[2k+1] = 0.75 * x[k]          + 0.25 * x[min(k+1,L-1)]
    # The four parity planes are written to o_ref[0, i*2+j] = out[2h+i, 2w+j].
    x = x_ref[0]                                          # (H, W, C)
    xp = jnp.concatenate([x[:1], x[:-1]], axis=0)         # clamped shift along H
    xn = jnp.concatenate([x[1:], x[-1:]], axis=0)
    eh = 0.25 * xp + 0.75 * x                             # rows 2h
    oh = 0.75 * x + 0.25 * xn                             # rows 2h+1
    for k, y in enumerate((eh, oh)):
        yp = jnp.concatenate([y[:, :1], y[:, :-1]], axis=1)   # clamped shift along W
        yn = jnp.concatenate([y[:, 1:], y[:, -1:]], axis=1)
        o_ref[0, 2 * k] = 0.25 * yp + 0.75 * y            # cols 2w
        o_ref[0, 2 * k + 1] = 0.75 * y + 0.25 * yn        # cols 2w+1


@jax.jit
def bilinear_upsample_x2(x_nhwc):
    """nn.Upsample(scale_factor=2, mode='bilinear') on NHWC data; single fused kernel."""
    N, H, W, C = x_nhwc.shape
    itemsize = jnp.dtype(x_nhwc.dtype).itemsize
    tile_bytes = 5 * H * W * C * itemsize
    y4 = pl.pallas_call(
        _upsample2x_kernel,
        out_shape=jax.ShapeDtypeStruct((N, 4, H, W, C), x_nhwc.dtype),
        grid_spec=pltpu.PrefetchScalarGridSpec(
            num_scalar_prefetch=0,
            grid=(N,),
            in_specs=[pl.BlockSpec((1, H, W, C), lambda n: (n, 0, 0, 0))],
            out_specs=pl.BlockSpec((1, 4, H, W, C), lambda n: (n, 0, 0, 0, 0))),
        compiler_params=pltpu.CompilerParams(
            dimension_semantics=("parallel",),
            vmem_limit_bytes=_vmem_limit(tile_bytes)),
    )(x_nhwc)
    # TODO(synk): the remaining interleaving transpose could be removed with strided
    # sublane stores directly into a (1, 2H, 2W, C) block; negligible at these sizes.
    y = y4.reshape(N, 2, 2, H, W, C)
    y = jnp.transpose(y, (0, 3, 1, 4, 2, 5))
    return y.reshape(N, 2 * H, 2 * W, C)


# ----------------------------------------------------------------------------------
# Plain-JAX glue: spatial convs, maxpool, ResNet-101 trunk structure
# ----------------------------------------------------------------------------------

def conv2d(x, w, stride, padding):
    # x: NHWC, w: HWIO (bf16, BN-scale pre-folded).  bf16 inputs, f32 accumulation.
    return lax.conv_general_dilated(
        x.astype(jnp.bfloat16), w.astype(jnp.bfloat16),
        window_strides=(stride, stride), padding=padding,
        dimension_numbers=("NHWC", "HWIO", "NHWC"),
        preferred_element_type=jnp.float32)


def maxpool_3x3_s2(x):
    return lax.reduce_window(x, jnp.asarray(-jnp.inf, x.dtype), lax.max,
                             (1, 3, 3, 1), (1, 2, 2, 1),
                             [(0, 0), (1, 1), (1, 1), (0, 0)])


def bottleneck_forward(p, x):
    stride = p["stride"]
    h = pointwise_conv_bn(x, p["w1"], p["b1"], relu=True)           # Pallas fused, bf16 out
    h = conv2d(h, p["w2"], stride, [(1, 1), (1, 1)])                # 3x3 (plain JAX), f32
    # BN scale is folded into w2; bias + ReLU + bf16 cast fuse into the conv epilogue.
    h = jnp.maximum(h + p["b2"], 0.0).astype(jnp.bfloat16)
    if "wd" in p:                                                   # projection shortcut
        sc_in = x[:, ::stride, ::stride, :] if stride > 1 else x
        sc = pointwise_conv_bn(sc_in, p["wd"], p["bd"], relu=False)
    else:
        sc = x
    # 1x1 expand + bias + residual add + ReLU fused in one Pallas call
    return pointwise_conv_bn(h, p["w3"], p["b3"], relu=True, res=sc)


def trunk_forward(tp, x):
    # ResNet-101: conv1 -> bn1 -> relu -> maxpool -> layer1 -> layer2 -> layer3
    x = conv2d(x, tp["conv1_w"], 2, [(3, 3), (3, 3)])
    x = jnp.maximum(x + tp["bn1_b"], 0.0).astype(jnp.bfloat16)
    x = maxpool_3x3_s2(x)
    for layer in ("layer1", "layer2", "layer3"):
        for blk in tp[layer]:
            x = bottleneck_forward(blk, x)
    return x  # (N, H/16, W/16, 1024) bf16


def graspnet_forward(params, color_nchw, depth_nchw):
    color = jnp.transpose(color_nchw, (0, 2, 3, 1)).astype(jnp.float32)   # NCHW -> NHWC
    depth = jnp.transpose(depth_nchw, (0, 2, 3, 1)).astype(jnp.float32)
    # depth_trunk = copy.deepcopy(color_trunk) -> shared params, so run one batched pass
    both = jnp.concatenate([color, depth], axis=0)
    feat = trunk_forward(params["trunk"], both)                           # (2N,h,w,1024) bf16
    cf, df = jnp.split(feat, 2, axis=0)
    h = params["head"]
    feat3 = head_forward(cf, df, h["w1a"], h["w1b"], h["b1"],
                         h["w2"], h["b2"], h["w3"], h["b3"])              # Pallas fused head
    up = bilinear_upsample_x2(feat3)                                      # Pallas upsample
    up = up[..., : params["n_classes"]]                                   # drop lane padding
    return jnp.transpose(up, (0, 3, 1, 2))                                # back to NCHW, f32


# ----------------------------------------------------------------------------------
# Deterministic synthetic parameter init (eval-mode BN folded into weights + bias)
# ----------------------------------------------------------------------------------

class KeyGen:
    def __init__(self, seed):
        self._key = jax.random.PRNGKey(seed)

    def __call__(self):
        self._key, sub = jax.random.split(self._key)
        return sub


def _normal(kg, shape, scale):
    return scale * jax.random.normal(kg(), shape, jnp.float32)


def _bn_affine(kg, c, eps=1e-5):
    # eval-mode BN folded to per-channel (a, b): y = a * x + b
    gamma = 1.0 + 0.1 * jax.random.normal(kg(), (c,), jnp.float32)
    beta = 0.1 * jax.random.normal(kg(), (c,), jnp.float32)
    rmean = 0.1 * jax.random.normal(kg(), (c,), jnp.float32)
    rvar = 1.0 + 0.1 * jnp.abs(jax.random.normal(kg(), (c,), jnp.float32))
    a = gamma * lax.rsqrt(rvar + eps)
    b = beta - rmean * a
    return a, b


def init_trunk(kg):
    a0, b0 = _bn_affine(kg, 64)
    tp = {"conv1_w": (_normal(kg, (7, 7, 3, 64), 0.05) * a0).astype(jnp.bfloat16),
          "bn1_b": b0}   # (64,) f32 broadcast bias

    def make_layer(cin, width, blocks, stride):
        layer = []
        for i in range(blocks):
            s = stride if i == 0 else 1
            blk_cin = cin if i == 0 else width * 4
            a1, b1 = _bn_affine(kg, width)
            a2, b2 = _bn_affine(kg, width)
            a3, b3 = _bn_affine(kg, width * 4)
            blk = {
                "stride": s,
                "w1": (_normal(kg, (blk_cin, width), 0.05) * a1).astype(jnp.bfloat16),
                "b1": b1.reshape(1, width),
                "w2": (_normal(kg, (3, 3, width, width), 0.05) * a2).astype(jnp.bfloat16),
                "b2": b2,   # broadcast bias after the 3x3 conv
                "w3": (_normal(kg, (width, width * 4), 0.05) * a3).astype(jnp.bfloat16),
                "b3": b3.reshape(1, width * 4),
            }
            if i == 0:  # projection shortcut
                ad, bd = _bn_affine(kg, width * 4)
                blk["wd"] = (_normal(kg, (blk_cin, width * 4), 0.05)
                             * ad).astype(jnp.bfloat16)
                blk["bd"] = bd.reshape(1, width * 4)
            layer.append(blk)
        return layer

    # ResNet-101 block counts (layer4 deleted in GraspNet.__init__)
    tp["layer1"] = make_layer(64, 64, 3, 1)
    tp["layer2"] = make_layer(256, 128, 4, 2)
    tp["layer3"] = make_layer(512, 256, 23, 2)
    return tp


def init_head(kg, n_classes, nc_pad=128):
    w1 = _normal(kg, (2048, 512), 0.03)        # conv1: 2048 -> 512 (1x1), split in halves
    b1 = _normal(kg, (1, 512), 0.01)
    w2 = _normal(kg, (512, 128), 0.05)         # conv2: 512 -> 128 (1x1)
    b2 = _normal(kg, (1, 128), 0.01)
    w3 = _normal(kg, (128, n_classes), 0.09)   # conv3: 128 -> n_classes (1x1)
    b3 = _normal(kg, (1, n_classes), 0.01)
    w3p = jnp.zeros((128, nc_pad), jnp.float32).at[:, :n_classes].set(w3)
    b3p = jnp.zeros((1, nc_pad), jnp.float32).at[:, :n_classes].set(b3)
    return {"w1a": w1[:1024].astype(jnp.bfloat16),
            "w1b": w1[1024:].astype(jnp.bfloat16), "b1": b1,
            "w2": w2.astype(jnp.bfloat16), "b2": b2,
            "w3": w3p.astype(jnp.bfloat16), "b3": b3p}


def init_graspnet(seed, n_classes):
    kg = KeyGen(seed)
    return {"trunk": init_trunk(kg),
            "head": init_head(kg, n_classes),
            "n_classes": n_classes}


# ----------------------------------------------------------------------------------

if __name__ == "__main__":
    N, Hin, Win = 2, 64, 64
    n_classes = 5

    kg = KeyGen(0)  # deterministic: PRNGKey(0)
    color = jax.random.normal(kg(), (N, 3, Hin, Win), jnp.float32)   # NCHW, like PyTorch
    depth = jax.random.normal(kg(), (N, 3, Hin, Win), jnp.float32)

    params = init_graspnet(0, n_classes)

    out = graspnet_forward(params, color, depth)
    out = jax.block_until_ready(out)

    # trunk: 64 -> 32 (conv1 s2) -> 16 (maxpool) -> 16 -> 8 -> 4; upsample x2 -> 8
    expected = (N, n_classes, (Hin // 16) * 2, (Win // 16) * 2)
    assert out.shape == expected, (out.shape, expected)
    assert bool(jnp.all(jnp.isfinite(out)))
    print("KERNEL_OK")
</pallas_src>

<mosaic_0001>
module attributes {stable_mosaic.version = 11 : i64} {
  func.func @_pw_kernel(%arg0: i32, %arg1: memref<512x64xbf16, #tpu.memory_space<vmem>>, %arg2: memref<64x64xbf16, #tpu.memory_space<vmem>>, %arg3: memref<1x64xf32, #tpu.memory_space<vmem>>, %arg4: memref<512x64xbf16, #tpu.memory_space<vmem>>) attributes {dimension_semantics = [#tpu.dimension_semantics<parallel>], iteration_bounds = array<i64: 2>, scalar_prefetch = 0 : i64, scratch_operands = 0 : i64, tpu.core_type = #tpu.core_type<tc>, window_params = [{transform_indices = @transform_0, window_bounds = array<i64: 512, 64>}, {pipeline_mode = #tpu.pipeline_mode<synchronous>, transform_indices = @transform_1, window_bounds = array<i64: 64, 64>}, {pipeline_mode = #tpu.pipeline_mode<synchronous>, transform_indices = @transform_2, window_bounds = array<i64: 1, 64>}, {transform_indices = @transform_3, window_bounds = array<i64: 512, 64>}]} {
    %c0 = arith.constant 0 : index
    %c0_0 = arith.constant 0 : index
    %0 = vector.load %arg1[%c0, %c0_0] : memref<512x64xbf16, #tpu.memory_space<vmem>>, vector<512x64xbf16>
    %c0_1 = arith.constant 0 : index
    %c0_2 = arith.constant 0 : index
    %1 = vector.load %arg2[%c0_1, %c0_2] : memref<64x64xbf16, #tpu.memory_space<vmem>>, vector<64x64xbf16>
    %cst = arith.constant dense<0.000000e+00> : vector<512x64xf32>
    %2 = tpu.matmul %0, %1, %cst {dimension_numbers = #tpu.dot_dimension_numbers<[1], [0], [0], [1], [0, 0, 1, 1], [], []>} : vector<512x64xbf16>, vector<64x64xbf16>, vector<512x64xf32> -> vector<512x64xf32>
    %c0_3 = arith.constant 0 : index
    %c0_4 = arith.constant 0 : index
    %3 = vector.load %arg3[%c0_3, %c0_4] : memref<1x64xf32, #tpu.memory_space<vmem>>, vector<1x64xf32>
    %4 = vector.broadcast %3 : vector<1x64xf32> to vector<512x64xf32>
    %5 = arith.addf %2, %4 : vector<512x64xf32>
    %cst_5 = arith.constant 0.000000e+00 : f32
    %6 = vector.broadcast %cst_5 : f32 to vector<512x64xf32>
    %7 = arith.maximumf %5, %6 : vector<512x64xf32>
    %8 = arith.truncf %7 : vector<512x64xf32> to vector<512x64xbf16>
    %c0_6 = arith.constant 0 : index
    %c0_7 = arith.constant 0 : index
    %9 = vector.load %arg4[%c0_6, %c0_7] : memref<512x64xbf16, #tpu.memory_space<vmem>>, vector<512x64xbf16>
    tpu.vector_store %arg4[%c0_6, %c0_7], %8 {strides = array<i32>} : memref<512x64xbf16, #tpu.memory_space<vmem>>, vector<512x64xbf16>,
    return
  }
  func.func @transform_0(%arg0: i32) -> (i32, i32) {
    %c0_i32 = arith.constant 0 : i32
    %c0_i32_0 = arith.constant 0 : i32
    return %arg0, %c0_i32 : i32, i32
  }
  func.func @transform_1(%arg0: i32) -> (i32, i32) {
    %c0_i32 = arith.constant 0 : i32
    %c0_i32_0 = arith.constant 0 : i32
    %c0_i32_1 = arith.constant 0 : i32
    return %c0_i32, %c0_i32_0 : i32, i32
  }
  func.func @transform_2(%arg0: i32) -> (i32, i32) {
    %c0_i32 = arith.constant 0 : i32
    %c0_i32_0 = arith.constant 0 : i32
    %c0_i32_1 = arith.constant 0 : i32
    return %c0_i32, %c0_i32_0 : i32, i32
  }
  func.func @transform_3(%arg0: i32) -> (i32, i32) {
    %c0_i32 = arith.constant 0 : i32
    %c0_i32_0 = arith.constant 0 : i32
    return %arg0, %c0_i32 : i32, i32
  }
}

</mosaic_0001>

<bundles_post_ra>
// kernel: pointwise_conv_bn.1
= control target key start
LH: loop header
LB: loop body
LE: loop exit
PB: predicated region body
PF: predicated region fallthrough
CT: control target
= control target key end

     0   :  { %8 = vsyncpa [#allocation3], 0  ;;  %s2400_s0 = inlined_call_operand.hbm [shape: bf16[1024,64], index: 0, kind: input, shape index: {}]   ;;  %s2401_s1 = inlined_call_operand.hbm [shape: bf16[64,64], index: 1, kind: input, shape index: {}]   ;;  %s2402_s2 = inlined_call_operand.vmem [shape: f32[1,64], index: 2, kind: input, shape index: {}]   ;;  %s2403_s3 = inlined_call_operand.hbm [shape: bf16[1024,64], index: 3, kind: output, shape index: {}]  }
   0x1   :  { %10 = vsyncpa [#allocation3 + $0x1], 0 }
   0x2   :  { %11 = vsyncpa [#allocation6], 0 }
   0x3   :  { %12 = vsyncpa [#allocation4], 0 }
   0x4   :  { %14 = vsyncpa [#allocation4 + $0x1], 0  ;;  %s1923_s12 = smov 0   ;;  %s1925_s13 = smov 0  }
   0x5   :  { %s1927_s14 = smov 0   ;;  %s1929_s15 = smov 0  }
   0x6 LB: > { %s1944_s16 = sadd.s32 4294967295, %s1894_s15   ;;  %s1338_s17 = sadd.s32 4294967294, %s1894_s15   ;;  %s1894_s15 = sphi %s1929_s15, %s2423_s15   ;;  %s1890_s14 = sphi %s1927_s14, %s2422_s14   ;;  %s1886_s13 = sphi %s1925_s13, %s2421_s13   ;;  %s1882_s12 = sphi %s1923_s12, %s2420_s12  }
   0x7   : > { %p40_p0 = scmp.ne.s32.totalorder %s1886_s13, %s1882_s12  ;;  %p2404_p1 = scmp.eq.s32.totalorder %s1944_s16, 0 }
   0x8   : > { %p112_p3 = scmp.eq.s32.totalorder %s1338_s17, 1  ;;  %p1339_p5 = scmp.ge.s32.totalorder %s1894_s15, 1 }
   0x9   : > { %p1953_p4 = por %p2404_p1, %p40_p0  ;;  %p119_p7 = scmp.lt.s32.totalorder %s1894_s15, 3 }
   0xa   : > { %p1958_p6 = por %p112_p3, %p40_p0  ;;  %s1896_s21 = smov [#allocation5]  }
   0xb   : > { %s2407_s18 = scalar_select %p1953_p4, 1, 0 }
   0xc   : > { %s2408_s19 = scalar_select %p1958_p6, 1, 0 }
   0xd   : > { %p1963_p8 = pnand %p1339_p5, %p119_p7  ;;  %s131_s22 = sshll.u32 %s1896_s21, 4  ;;  %s1967_s22 = int_to_ptr.vmem [resolvable:$true] %s131_s22 }
   0xe   : > { %s1979_s24 = sadd.s32 1, %s1894_s15   ;;  %s27_s25 = sadd.s32 1, %s1890_s14 }
   0xf   : > { %s2409_s20 = scalar_select %p1963_p8, 1, 0 }
  0x10   : > { %p1677_p9 = pneg %p1963_p8  ;;  %s24_s26 = ssub.s32 %s1894_s15, %s1979_s24 }
  0x11   : > { %s1766_s29 = scalar_lea.hbm %s2401_s1, 512 }
  0x12   : > { %p1974_p11 = pnand %p1677_p9, %p2404_p1  ;;  %p1767_p12 = scmp.ne.s32.totalorder %s2401_s1, %s1766_s29 }
  0x13   : > { %p1773_p5 = scmp.lt.u32.totalorder %s1766_s29, %s2401_s1 }
  0x14   : > { %p1768_p13 = pneg %p1974_p11 }
  0x16   : > { %p1769_p0 = pnand %p1768_p13, %p1767_p12 }
  0x18   : > { %p1770_p3 = pneg %p1769_p0 }
  0x1a   : > { %p1775_p7 = pnand %p1773_p5, %p1770_p3 }
  0x1c   : > { %1778 = shalt.err (!%p1775_p7)
}
  0x1d   : > { %s1779_s7 = scalar_lea.vmem %s1967_s22, 512  ;;  %p1787_p2 = scmp.lt.s32.totalorder %s1967_s22, %s1967_s22 }
  0x1e   : > { %p1780_p9 = scmp.ne.s32.totalorder %s1967_s22, %s1779_s7  ;;  %p1788_p6 = scmp.lt.s32.totalorder %s1779_s7, %s1779_s7 }
  0x20   : > { %p1782_p10 = pnand %p1780_p9, %p1768_p13  ;;  %p1789_p4 = por %p1788_p6, %p1787_p2 }
  0x22   : > { %p1783_p1 = pneg %p1782_p10 }
  0x24   : > { %p1790_p8 = pnand %p1789_p4, %p1783_p1 }
  0x26   : > { %1793 = shalt.err (!%p1790_p8)
}
  0x27   : > { %s1897_s8 = smov 64   ;;  %s1898_s9 = smov 4  }
  0x28   : > { %1680 = dma.hbm_to_vmem [thread:$0]  (!%p1974_p11), %s2401_s1, 512, %s1967_s22, [#allocation6], %s1897_s8, %s1897_s8, %s1898_s9  }
  0x29   : > { %p25_p1 = scmp.eq.s32.totalorder %s24_s26, 0  ;;  %p34_p2 = scmp.ne.s32.totalorder %s1890_s14, %s1886_s13 }
  0x2a   : > { %p35_p4 = scmp.eq.s32.totalorder %s1894_s15, 0  ;;  %p1690_p6 = scmp.lt.s32.totalorder %s1894_s15, 2 }
  0x2b   : > { %s2013_s17 = scalar_select %p25_p1, %s1890_s14, %s27_s25  }
  0x2c   : > { %p36_p8 = por %p35_p4, %p34_p2  ;;  %p2411_p10 = scmp.eq.s32.totalorder %s1944_s16, 1 }
  0x2d   : > { %s148_s23 = sand.u32 1, %s1890_s14   ;;  %s1487_s27 = sshll.u32 %s1894_s15, 12 }
  0x2e   : > { %p2017_p12 = por %p2411_p10, %p34_p2  ;;  %s1342_s28 = sshll.u32 %s148_s23, 8 }
  0x2f   : > { %s2026_s4 = scalar_lea.hbm %s2400_s0, %s1487_s27  ;;  %s152_s22 = scalar_lea.vmem [#allocation2], %s1342_s28 }
  0x30   : > { %s159_s25 = sshll.u32 %s152_s22, 4  ;;  %p2028_p11 = pnand %p1690_p6, %p36_p8  ;;  %s2032_s25 = int_to_ptr.vmem [resolvable:$true] %s159_s25 }
  0x31   : > { %s2034_s5 = scalar_lea.sflag [#allocation3], %s148_s23  ;;  %s1794_s6 = scalar_lea.hbm %s2026_s4, 4096 }
  0x32   : > { %p1795_p13 = scmp.ne.s32.totalorder %s2026_s4, %s1794_s6  ;;  %p1796_p0 = pneg %p2028_p11 }
  0x33   : > { %s1799_s11 = scalar_lea.hbm %s2400_s0, 8192  ;;  %p1800_p7 = scmp.lt.u32.totalorder %s2026_s4, %s2400_s0 }
  0x34   : > { %p1797_p3 = pnand %p1796_p0, %p1795_p13  ;;  %p1801_p9 = scmp.lt.u32.totalorder %s1799_s11, %s1794_s6 }
  0x35   : > { %p1803_p2 = scmp.lt.u32.totalorder %s1794_s6, %s2026_s4 }
  0x36   : > { %p1798_p5 = pneg %p1797_p3  ;;  %p1802_p1 = por %p1801_p9, %p1800_p7 }
  0x38   : > { %p1804_p4 = por %p1803_p2, %p1802_p1 }
  0x3a   : > { %p1805_p6 = pnand %p1804_p4, %p1798_p5 }
  0x3c   : > { %1808 = shalt.err (!%p1805_p6)
}
  0x3d   : > { %s1809_s23 = scalar_lea.vmem %s2032_s25, 4096  ;;  %s1899_s29 = smov [#allocation2]  }
  0x3e   : > { %p1810_p8 = scmp.ne.s32.totalorder %s2032_s25, %s1809_s23  ;;  %s1814_s30 = sshll.u32 %s1899_s29, 4  ;;  %s1815_s30 = int_to_ptr.vmem [resolvable:$false] %s1814_s30 }
  0x3f   : > { %s1816_s22 = scalar_lea.vmem %s1815_s30, 8192  ;;  %p1817_p3 = scmp.lt.s32.totalorder %s2032_s25, %s1815_s30 }
  0x40   : > { %p1812_p10 = pnand %p1810_p8, %p1796_p0  ;;  %p1818_p7 = scmp.lt.s32.totalorder %s1816_s22, %s1809_s23 }
  0x42   : > { %p1813_p13 = pneg %p1812_p10  ;;  %p1819_p9 = por %p1818_p7, %p1817_p3 }
  0x44   : > { %p1820_p1 = pnand %p1819_p9, %p1813_p13 }
  0x46   : > { %1823 = shalt.err (!%p1820_p1)
}
  0x47   : > { %1684 = dma.hbm_to_vmem [thread:$0]  (!%p2028_p11), %s2026_s4, 4096, %s2032_s25, %s2034_s5, %s1897_s8, %s1897_s8, %s1898_s9  }
  0x48   : > { %p2414_p0 = scmp.ne.s32.totalorder %s2409_s20, 0 }
  0x49   : > { %s2068_s6 = sand.u32 (!%p2414_p0), 1, %s1886_s13   ;;  %p2415_p5 = scmp.ne.s32.totalorder (!%p2414_p0), %s2407_s18, 0 }
  0x4a   : > { %171 = sbr.rel (%p2414_p0) target bundleno = 394 (0x18a), region = 32  ;;  %s1346_s7 = sshll.u32 (!%p2414_p0), %s2068_s6, 8 }
  0x4b   : > { %s174_s10 = scalar_lea.sflag (!%p2414_p0), [#allocation3], %s2068_s6  ;;  %s2074_s26 = scalar_lea.vmem (!%p2414_p0), [#allocation2], %s1346_s7 }
  0x51   : > { %1869 = dma.done.wait (%p2415_p5), %s174_s10, 4096  }
  0x52   : > { %1871 = vsyncadd (%p2415_p5), %s174_s10, 4294963200  ;;  %p2416_p11 = scmp.eq.s32.totalorder %s1944_s16, 0 }
  0x54   : > { %1873 = dma.done.wait (%p2416_p11), [#allocation6], 512   ;;  %p2417_p2 = pmov %p2416_p11 }
  0x55   : > { %v1730_v0 = vld [vmem:[#allocation5] sm:$0xff]   ;;  %v1731_v1 = vld [vmem:[#allocation5 + $0x8] sm:$0xff]   ;;  %v1732_v2 = vld [vmem:[#allocation5 + $0x10] sm:$0xff]   ;;  %vm470_vm0 = vcmask 523264   ;;  %vm1176_vm1 = vcmask 519168   ;;  %s2163_s8 = scalar_lea.vmem [#allocation7], %s1346_s7 }
  0x56   : > { %1875 = vsyncadd (%p2417_p2), [#allocation6], 4294966784  ;;  %1589 = vmatprep.subr.bf16.mxu0 %v1730_v0  ;;  %1661 = vmatprep.subr.bf16.mxu1 %v1730_v0  ;;  %v1734_v3 = vld [vmem:[%s2074_s26] sm:$0xff]   ;;  %v1733_v5 = vld [vmem:[#allocation5 + $0x18] sm:$0xff]   ;;  %s1552_s9 = sshll.u32 %s1944_s16, 12  ;;  %s1255_s4 = sshll.u32 %s2163_s8, 4  ;;  %s2344_s4 = int_to_ptr.vmem [resolvable:$true] %s1255_s4 }
  0x57   : > { %1590 = vmatpush3.bf16.msra.mxu0 %v1730_v0  ;;  %1665 = vmatpush3.bf16.msra.mxu1 %v1730_v0  ;;  %v1735_v4 = vld [vmem:[%s2074_s26 + $0x80] sm:$0xff]   ;;  %v1736_v6 = vld [vmem:[%s2074_s26 + $0x8] sm:$0xff]   ;;  %v1738_v8 = vld [vmem:[%s2074_s26 + $0x10] sm:$0xff]   ;;  %s2342_s5 = scalar_lea.hbm %s2403_s3, %s1552_s9  ;;  %s1242_s11 = scalar_lea.sflag [#allocation4], %s2068_s6 }
  0x58   : > { %1591 = vmatprep.subr.bf16.mxu0 %v1731_v1  ;;  %1662 = vmatprep.subr.bf16.mxu1 %v1731_v1  ;;  %v1737_v7 = vld [vmem:[%s2074_s26 + $0x88] sm:$0xff]   ;;  %v1739_v9 = vld [vmem:[%s2074_s26 + $0x90] sm:$0xff]   ;;  %v1740_v10 = vld [vmem:[%s2074_s26 + $0x18] sm:$0xff]   ;;  %s1824_s27 = scalar_lea.vmem %s2344_s4, 4096  ;;  %s1900_s28 = smov [#allocation7]  }
  0x59   : > { %1597 = vmatprep.mubr.msk.bf16.mxu0 %vm470_vm0, %v1734_v3  ;;  %1629 = vmatprep.mubr.msk.bf16.mxu1 %vm470_vm0, %v1735_v4  ;;  %v1741_v11 = vld [vmem:[%s2074_s26 + $0x98] sm:$0xff]   ;;  %v1742_v12 = vld [vmem:[%s2074_s26 + $0x20] sm:$0xff]   ;;  %v1744_v14 = vld [vmem:[%s2074_s26 + $0x28] sm:$0xff]   ;;  %p1825_p4 = scmp.ne.s32.totalorder %s2344_s4, %s1824_s27  ;;  %s1828_s23 = sshll.u32 %s1900_s28, 4  ;;  %s1829_s23 = int_to_ptr.vmem [resolvable:$false] %s1828_s23 }
  0x5a   : > { %v1743_v13 = vld [vmem:[%s2074_s26 + $0xa0] sm:$0xff]   ;;  %v1745_v15 = vld [vmem:[%s2074_s26 + $0xa8] sm:$0xff]   ;;  %v1746_v16 = vld [vmem:[%s2074_s26 + $0x30] sm:$0xff]   ;;  %s1830_s29 = scalar_lea.vmem %s1829_s23, 8192  ;;  %p1831_p10 = scmp.lt.s32.totalorder %s2344_s4, %s1829_s23 }
  0x5b   : > { %1592 = vmatpush3.bf16.msra.mxu0 %v1731_v1  ;;  %1666 = vmatpush3.bf16.msra.mxu1 %v1731_v1  ;;  %v1747_v17 = vld [vmem:[%s2074_s26 + $0xb0] sm:$0xff]   ;;  %v1748_v18 = vld [vmem:[%s2074_s26 + $0x38] sm:$0xff]   ;;  %v1750_v20 = vld [vmem:[%s2074_s26 + $0x40] sm:$0xff]   ;;  %p1826_p6 = pnand %p1825_p4, %p2017_p12  ;;  %p1832_p13 = scmp.lt.s32.totalorder %s1830_s29, %s1824_s27 }
  0x5c   : > { %1593 = vmatprep.subr.bf16.mxu0 %v1732_v2  ;;  %1663 = vmatprep.subr.bf16.mxu1 %v1732_v2  ;;  %v1749_v19 = vld [vmem:[%s2074_s26 + $0xb8] sm:$0xff]   ;;  %v1751_v21 = vld [vmem:[%s2074_s26 + $0xc0] sm:$0xff]   ;;  %v1752_v22 = vld [vmem:[%s2074_s26 + $0x48] sm:$0xff]  }
  0x5d   : > { %v1753_v23 = vld [vmem:[%s2074_s26 + $0xc8] sm:$0xff]   ;;  %v1754_v24 = vld [vmem:[%s2074_s26 + $0x50] sm:$0xff]   ;;  %v1756_v26 = vld [vmem:[%s2074_s26 + $0x58] sm:$0xff]   ;;  %p1827_p8 = pneg %p1826_p6  ;;  %p1833_p3 = por %p1832_p13, %p1831_p10 }
  0x5e   : > { %v1755_v25 = vld [vmem:[%s2074_s26 + $0xd0] sm:$0xff]   ;;  %v1757_v27 = vld [vmem:[%s2074_s26 + $0xd8] sm:$0xff]   ;;  %v1758_v28 = vld [vmem:[%s2074_s26 + $0x60] sm:$0xff]  }
  0x5f   : > { %1594 = vmatpush3.bf16.msra.mxu0 %v1732_v2  ;;  %1667 = vmatpush3.bf16.msra.mxu1 %v1732_v2  ;;  %v1759_v29 = vld [vmem:[%s2074_s26 + $0xe0] sm:$0xff]   ;;  %v1760_v30 = vld [vmem:[%s2074_s26 + $0x68] sm:$0xff]   ;;  %v1762_v32 = vld [vmem:[%s2074_s26 + $0x70] sm:$0xff]   ;;  %p1834_p7 = pnand %p1833_p3, %p1827_p8 }
  0x60   : > { %1595 = vmatprep.subr.bf16.mxu0 %v1733_v5  ;;  %1664 = vmatprep.subr.bf16.mxu1 %v1733_v5  ;;  %v1761_v31 = vld [vmem:[%s2074_s26 + $0xe8] sm:$0xff]   ;;  %v1763_v33 = vld [vmem:[%s2074_s26 + $0xf0] sm:$0xff]   ;;  %v1764_v34 = vld [vmem:[%s2074_s26 + $0x78] sm:$0xff]  }
  0x61   : > { %v1765_v35 = vld [vmem:[%s2074_s26 + $0xf8] sm:$0xff]   ;;  %v2151_v36 = vld [vmem:[%s2402_s2] ss:$0 sm:$0xff] }
  0x63   : > { %1596 = vmatpush3.bf16.msra.mxu0 %v1733_v5  ;;  %1668 = vmatpush3.bf16.msra.mxu1 %v1733_v5 }
  0x66   : > { %1598 = vmatmul.mubr.msk.bf16.vlgmr.msra.gmra.mrb[0].mxu0 %vm470_vm0, %v1736_v6  ;;  %1630 = vmatmul.mubr.msk.bf16.vlgmr.msra.gmra.mrb[0].mxu1 %vm470_vm0, %v1737_v7 }
  0x67   : > { %1601 = vmatprep.mubr.msk.bf16.mxu0 %vm470_vm0, %v1738_v8  ;;  %1633 = vmatprep.mubr.msk.bf16.mxu1 %vm470_vm0, %v1739_v9 }
  0x6e   : > { %1602 = vmatmul.mubr.msk.bf16.gmra.mrb[4].mxu0 %vm470_vm0, %v1740_v10  ;;  %1634 = vmatmul.mubr.msk.bf16.gmra.mrb[4].mxu1 %vm470_vm0, %v1741_v11 }
  0x6f   : > { %1605 = vmatprep.mubr.msk.bf16.mxu0 %vm470_vm0, %v1742_v12  ;;  %1637 = vmatprep.mubr.msk.bf16.mxu1 %vm470_vm0, %v1743_v13 }
  0x76   : > { %1606 = vmatmul.mubr.msk.bf16.gmra.mrb[8].mxu0 %vm470_vm0, %v1744_v14  ;;  %1638 = vmatmul.mubr.msk.bf16.gmra.mrb[8].mxu1 %vm470_vm0, %v1745_v15 }
  0x77   : > { %1609 = vmatprep.mubr.msk.bf16.mxu0 %vm470_vm0, %v1746_v16  ;;  %1641 = vmatprep.mubr.msk.bf16.mxu1 %vm470_vm0, %v1747_v17 }
  0x7e   : > { %1610 = vmatmul.mubr.msk.bf16.gmra.mrb[12].mxu0 %vm470_vm0, %v1748_v18  ;;  %1642 = vmatmul.mubr.msk.bf16.gmra.mrb[12].mxu1 %vm470_vm0, %v1749_v19 }
  0x7f   : > { %1613 = vmatprep.mubr.msk.bf16.mxu0 %vm470_vm0, %v1750_v20  ;;  %1645 = vmatprep.mubr.msk.bf16.mxu1 %vm470_vm0, %v1751_v21 }
  0x86   : > { %1614 = vmatmul.mubr.msk.bf16.gmra.mrb[16].mxu0 %vm470_vm0, %v1752_v22  ;;  %1646 = vmatmul.mubr.msk.bf16.gmra.mrb[16].mxu1 %vm470_vm0, %v1753_v23 }
  0x87   : > { %1617 = vmatprep.mubr.msk.bf16.mxu0 %vm470_vm0, %v1754_v24  ;;  %1649 = vmatprep.mubr.msk.bf16.mxu1 %vm470_vm0, %v1755_v25 }
  0x8e   : > { %1618 = vmatmul.mubr.msk.bf16.gmra.mrb[20].mxu0 %vm470_vm0, %v1756_v26  ;;  %1650 = vmatmul.mubr.msk.bf16.gmra.mrb[20].mxu1 %vm470_vm0, %v1757_v27 }
  0x8f   : > { %1621 = vmatprep.mubr.msk.bf16.mxu0 %vm470_vm0, %v1758_v28  ;;  %1653 = vmatprep.mubr.msk.bf16.mxu1 %vm470_vm0, %v1759_v29 }
  0x96   : > { %1622 = vmatmul.mubr.msk.bf16.gmra.mrb[24].mxu0 %vm470_vm0, %v1760_v30  ;;  %1654 = vmatmul.mubr.msk.bf16.gmra.mrb[24].mxu1 %vm470_vm0, %v1761_v31 }
  0x97   : > { %1625 = vmatprep.mubr.msk.bf16.mxu0 %vm470_vm0, %v1762_v32  ;;  %1657 = vmatprep.mubr.msk.bf16.mxu1 %vm470_vm0, %v1763_v33 }
  0x9e   : > { %1626 = vmatmul.mubr.msk.bf16.gmra.mrb[28].mxu0 %vm470_vm0, %v1764_v34  ;;  %1658 = vmatmul.mubr.msk.bf16.gmra.mrb[28].mxu1 %vm470_vm0, %v1765_v35 }
 0x139   : > { %v1599_v37 = vpop.f32.mrb[0].mxu0  ;;  %v1631_v38 = vpop.f32.mrb[0].mxu1 }
 0x13a   : > { %v610_v39 = vadd.f32 %v1599_v37, %v2151_v36  ;;  %v738_v40 = vadd.f32 %v1631_v38, %v2151_v36  ;;  %v601_v41 = vpop.f32.mrb[1].mxu0  ;;  %v729_v42 = vpop.f32.mrb[1].mxu1 }
 0x13b   : > { %v602_v43 = vadd.f32 %v2151_v36, %v601_v41  ;;  %v730_v44 = vadd.f32 %v2151_v36, %v729_v42  ;;  %v1600_v45 = vpop.f32.mrb[2].mxu0  ;;  %v1632_v46 = vpop.f32.mrb[2].mxu1 }
 0x13c   : > { %v858_v47 = vmax.f32 %v610_v39, 0.0  ;;  %v890_v48 = vmax.f32 %v738_v40, 0.0  ;;  %v613_v49 = vadd.f32 %v1600_v45, %v2151_v36  ;;  %v741_v50 = vadd.f32 %v1632_v46, %v2151_v36  ;;  %v604_v51 = vpop.f32.mrb[3].mxu0  ;;  %v732_v52 = vpop.f32.mrb[3].mxu1 }
 0x13d   : > { %v856_v53 = vmax.f32 %v602_v43, 0.0  ;;  %v888_v54 = vmax.f32 %v730_v44, 0.0  ;;  %v605_v55 = vadd.f32 %v2151_v36, %v604_v51  ;;  %v733_v56 = vadd.f32 %v2151_v36, %v732_v52 }
 0x13e   : > { %v1490_v57 = vpack.c.bf16 %v858_v47, %v858_v47  ;;  %v1522_v58 = vpack.c.bf16 %v890_v48, %v890_v48  ;;  %v859_v59 = vmax.f32 %v613_v49, 0.0  ;;  %v891_v60 = vmax.f32 %v741_v50, 0.0 }
 0x13f   : > { %v1488_v61 = vpack.c.bf16 %v856_v53, %v856_v53  ;;  %v1520_v62 = vpack.c.bf16 %v888_v54, %v888_v54  ;;  %v857_v63 = vmax.f32 %v605_v55, 0.0  ;;  %v889_v0 = vmax.f32 %v733_v56, 0.0 }
 0x140   : > { %1179 = vst.msk [vmem:[%s2163_s8 + $0x8] sm:$0xf] %vm1176_vm1, %v1490_v57  ;;  %1211 = vst.msk [vmem:[%s2163_s8 + $0x88] sm:$0xf] %vm1176_vm1, %v1522_v58  ;;  %v1491_v1 = vpack.c.bf16 %v859_v59, %v859_v59  ;;  %v1523_v2 = vpack.c.bf16 %v891_v60, %v891_v60 }
 0x141   : > { %1177 = vst.msk [vmem:[%s2163_s8] sm:$0xf] %vm1176_vm1, %v1488_v61  ;;  %1209 = vst.msk [vmem:[%s2163_s8 + $0x80] sm:$0xf] %vm1176_vm1, %v1520_v62  ;;  %v1489_v3 = vpack.c.bf16 %v857_v63, %v857_v63  ;;  %v1521_v4 = vpack.c.bf16 %v889_v0, %v889_v0  ;;  %v1603_v5 = vpop.f32.mrb[4].mxu0  ;;  %v1635_v6 = vpop.f32.mrb[4].mxu1 }
 0x142   : > { %1180 = vst.msk [vmem:[%s2163_s8 + $0xc] sm:$0xf] %vm1176_vm1, %v1491_v1  ;;  %1212 = vst.msk [vmem:[%s2163_s8 + $0x8c] sm:$0xf] %vm1176_vm1, %v1523_v2  ;;  %v626_v7 = vadd.f32 %v1603_v5, %v2151_v36  ;;  %v754_v8 = vadd.f32 %v1635_v6, %v2151_v36  ;;  %v617_v9 = vpop.f32.mrb[5].mxu0  ;;  %v745_v10 = vpop.f32.mrb[5].mxu1 }
 0x143   : > { %1178 = vst.msk [vmem:[%s2163_s8 + $0x4] sm:$0xf] %vm1176_vm1, %v1489_v3  ;;  %1210 = vst.msk [vmem:[%s2163_s8 + $0x84] sm:$0xf] %vm1176_vm1, %v1521_v4  ;;  %v618_v11 = vadd.f32 %v2151_v36, %v617_v9  ;;  %v746_v12 = vadd.f32 %v2151_v36, %v745_v10  ;;  %v1604_v13 = vpop.f32.mrb[6].mxu0  ;;  %v1636_v14 = vpop.f32.mrb[6].mxu1 }
 0x144   : > { %v862_v15 = vmax.f32 %v626_v7, 0.0  ;;  %v894_v16 = vmax.f32 %v754_v8, 0.0  ;;  %v629_v17 = vadd.f32 %v1604_v13, %v2151_v36  ;;  %v757_v18 = vadd.f32 %v1636_v14, %v2151_v36  ;;  %v620_v19 = vpop.f32.mrb[7].mxu0  ;;  %v748_v20 = vpop.f32.mrb[7].mxu1 }
 0x145   : > { %v860_v21 = vmax.f32 %v618_v11, 0.0  ;;  %v892_v22 = vmax.f32 %v746_v12, 0.0  ;;  %v621_v23 = vadd.f32 %v2151_v36, %v620_v19  ;;  %v749_v24 = vadd.f32 %v2151_v36, %v748_v20 }
 0x146   : > { %v1494_v25 = vpack.c.bf16 %v862_v15, %v862_v15  ;;  %v1526_v26 = vpack.c.bf16 %v894_v16, %v894_v16  ;;  %v863_v27 = vmax.f32 %v629_v17, 0.0  ;;  %v895_v28 = vmax.f32 %v757_v18, 0.0 }
 0x147   : > { %v1492_v29 = vpack.c.bf16 %v860_v21, %v860_v21  ;;  %v1524_v30 = vpack.c.bf16 %v892_v22, %v892_v22  ;;  %v861_v31 = vmax.f32 %v621_v23, 0.0  ;;  %v893_v32 = vmax.f32 %v749_v24, 0.0 }
 0x148   : > { %1183 = vst.msk [vmem:[%s2163_s8 + $0x18] sm:$0xf] %vm1176_vm1, %v1494_v25  ;;  %1215 = vst.msk [vmem:[%s2163_s8 + $0x98] sm:$0xf] %vm1176_vm1, %v1526_v26  ;;  %v1495_v33 = vpack.c.bf16 %v863_v27, %v863_v27  ;;  %v1527_v34 = vpack.c.bf16 %v895_v28, %v895_v28 }
 0x149   : > { %1181 = vst.msk [vmem:[%s2163_s8 + $0x10] sm:$0xf] %vm1176_vm1, %v1492_v29  ;;  %1213 = vst.msk [vmem:[%s2163_s8 + $0x90] sm:$0xf] %vm1176_vm1, %v1524_v30  ;;  %v1493_v35 = vpack.c.bf16 %v861_v31, %v861_v31  ;;  %v1525_v37 = vpack.c.bf16 %v893_v32, %v893_v32  ;;  %v1607_v38 = vpop.f32.mrb[8].mxu0  ;;  %v1639_v39 = vpop.f32.mrb[8].mxu1 }
 0x14a   : > { %1184 = vst.msk [vmem:[%s2163_s8 + $0x1c] sm:$0xf] %vm1176_vm1, %v1495_v33  ;;  %1216 = vst.msk [vmem:[%s2163_s8 + $0x9c] sm:$0xf] %vm1176_vm1, %v1527_v34  ;;  %v642_v40 = vadd.f32 %v1607_v38, %v2151_v36  ;;  %v770_v41 = vadd.f32 %v1639_v39, %v2151_v36  ;;  %v633_v42 = vpop.f32.mrb[9].mxu0  ;;  %v761_v43 = vpop.f32.mrb[9].mxu1 }
 0x14b   : > { %1182 = vst.msk [vmem:[%s2163_s8 + $0x14] sm:$0xf] %vm1176_vm1, %v1493_v35  ;;  %1214 = vst.msk [vmem:[%s2163_s8 + $0x94] sm:$0xf] %vm1176_vm1, %v1525_v37  ;;  %v634_v44 = vadd.f32 %v2151_v36, %v633_v42  ;;  %v762_v45 = vadd.f32 %v2151_v36, %v761_v43  ;;  %v1608_v46 = vpop.f32.mrb[10].mxu0  ;;  %v1640_v47 = vpop.f32.mrb[10].mxu1 }
 0x14c   : > { %v866_v48 = vmax.f32 %v642_v40, 0.0  ;;  %v898_v49 = vmax.f32 %v770_v41, 0.0  ;;  %v645_v50 = vadd.f32 %v1608_v46, %v2151_v36  ;;  %v773_v51 = vadd.f32 %v1640_v47, %v2151_v36  ;;  %v636_v52 = vpop.f32.mrb[11].mxu0  ;;  %v764_v53 = vpop.f32.mrb[11].mxu1 }
 0x14d   : > { %v864_v54 = vmax.f32 %v634_v44, 0.0  ;;  %v896_v55 = vmax.f32 %v762_v45, 0.0  ;;  %v637_v56 = vadd.f32 %v2151_v36, %v636_v52  ;;  %v765_v57 = vadd.f32 %v2151_v36, %v764_v53 }
 0x14e   : > { %v1498_v58 = vpack.c.bf16 %v866_v48, %v866_v48  ;;  %v1530_v59 = vpack.c.bf16 %v898_v49, %v898_v49  ;;  %v867_v60 = vmax.f32 %v645_v50, 0.0  ;;  %v899_v61 = vmax.f32 %v773_v51, 0.0 }
 0x14f   : > { %v1496_v62 = vpack.c.bf16 %v864_v54, %v864_v54  ;;  %v1528_v63 = vpack.c.bf16 %v896_v55, %v896_v55  ;;  %v865_v0 = vmax.f32 %v637_v56, 0.0  ;;  %v897_v1 = vmax.f32 %v765_v57, 0.0 }
 0x150   : > { %1187 = vst.msk [vmem:[%s2163_s8 + $0x28] sm:$0xf] %vm1176_vm1, %v1498_v58  ;;  %1219 = vst.msk [vmem:[%s2163_s8 + $0xa8] sm:$0xf] %vm1176_vm1, %v1530_v59  ;;  %v1499_v2 = vpack.c.bf16 %v867_v60, %v867_v60  ;;  %v1531_v3 = vpack.c.bf16 %v899_v61, %v899_v61 }
 0x151   : > { %1185 = vst.msk [vmem:[%s2163_s8 + $0x20] sm:$0xf] %vm1176_vm1, %v1496_v62  ;;  %1217 = vst.msk [vmem:[%s2163_s8 + $0xa0] sm:$0xf] %vm1176_vm1, %v1528_v63  ;;  %v1497_v4 = vpack.c.bf16 %v865_v0, %v865_v0  ;;  %v1529_v5 = vpack.c.bf16 %v897_v1, %v897_v1  ;;  %v1611_v6 = vpop.f32.mrb[12].mxu0  ;;  %v1643_v7 = vpop.f32.mrb[12].mxu1 }
 0x152   : > { %1188 = vst.msk [vmem:[%s2163_s8 + $0x2c] sm:$0xf] %vm1176_vm1, %v1499_v2  ;;  %1220 = vst.msk [vmem:[%s2163_s8 + $0xac] sm:$0xf] %vm1176_vm1, %v1531_v3  ;;  %v658_v8 = vadd.f32 %v1611_v6, %v2151_v36  ;;  %v786_v9 = vadd.f32 %v1643_v7, %v2151_v36  ;;  %v649_v10 = vpop.f32.mrb[13].mxu0  ;;  %v777_v11 = vpop.f32.mrb[13].mxu1 }
 0x153   : > { %1186 = vst.msk [vmem:[%s2163_s8 + $0x24] sm:$0xf] %vm1176_vm1, %v1497_v4  ;;  %1218 = vst.msk [vmem:[%s2163_s8 + $0xa4] sm:$0xf] %vm1176_vm1, %v1529_v5  ;;  %v650_v12 = vadd.f32 %v2151_v36, %v649_v10  ;;  %v778_v13 = vadd.f32 %v2151_v36, %v777_v11  ;;  %v1612_v14 = vpop.f32.mrb[14].mxu0  ;;  %v1644_v15 = vpop.f32.mrb[14].mxu1 }
 0x154   : > { %v870_v16 = vmax.f32 %v658_v8, 0.0  ;;  %v902_v17 = vmax.f32 %v786_v9, 0.0  ;;  %v661_v18 = vadd.f32 %v1612_v14, %v2151_v36  ;;  %v789_v19 = vadd.f32 %v1644_v15, %v2151_v36  ;;  %v652_v20 = vpop.f32.mrb[15].mxu0  ;;  %v780_v21 = vpop.f32.mrb[15].mxu1 }
 0x155   : > { %v868_v22 = vmax.f32 %v650_v12, 0.0  ;;  %v900_v23 = vmax.f32 %v778_v13, 0.0  ;;  %v653_v24 = vadd.f32 %v2151_v36, %v652_v20  ;;  %v781_v25 = vadd.f32 %v2151_v36, %v780_v21 }
 0x156   : > { %v1502_v26 = vpack.c.bf16 %v870_v16, %v870_v16  ;;  %v1534_v27 = vpack.c.bf16 %v902_v17, %v902_v17  ;;  %v871_v28 = vmax.f32 %v661_v18, 0.0  ;;  %v903_v29 = vmax.f32 %v789_v19, 0.0 }
 0x157   : > { %v1500_v30 = vpack.c.bf16 %v868_v22, %v868_v22  ;;  %v1532_v31 = vpack.c.bf16 %v900_v23, %v900_v23  ;;  %v869_v32 = vmax.f32 %v653_v24, 0.0  ;;  %v901_v33 = vmax.f32 %v781_v25, 0.0 }
 0x158   : > { %1191 = vst.msk [vmem:[%s2163_s8 + $0x38] sm:$0xf] %vm1176_vm1, %v1502_v26  ;;  %1223 = vst.msk [vmem:[%s2163_s8 + $0xb8] sm:$0xf] %vm1176_vm1, %v1534_v27  ;;  %v1503_v34 = vpack.c.bf16 %v871_v28, %v871_v28  ;;  %v1535_v35 = vpack.c.bf16 %v903_v29, %v903_v29 }
 0x159   : > { %1189 = vst.msk [vmem:[%s2163_s8 + $0x30] sm:$0xf] %vm1176_vm1, %v1500_v30  ;;  %1221 = vst.msk [vmem:[%s2163_s8 + $0xb0] sm:$0xf] %vm1176_vm1, %v1532_v31  ;;  %v1501_v37 = vpack.c.bf16 %v869_v32, %v869_v32  ;;  %v1533_v38 = vpack.c.bf16 %v901_v33, %v901_v33  ;;  %v1615_v39 = vpop.f32.mrb[16].mxu0  ;;  %v1647_v40 = vpop.f32.mrb[16].mxu1 }
 0x15a   : > { %1192 = vst.msk [vmem:[%s2163_s8 + $0x3c] sm:$0xf] %vm1176_vm1, %v1503_v34  ;;  %1224 = vst.msk [vmem:[%s2163_s8 + $0xbc] sm:$0xf] %vm1176_vm1, %v1535_v35  ;;  %v674_v41 = vadd.f32 %v1615_v39, %v2151_v36  ;;  %v802_v42 = vadd.f32 %v1647_v40, %v2151_v36  ;;  %v665_v43 = vpop.f32.mrb[17].mxu0  ;;  %v793_v44 = vpop.f32.mrb[17].mxu1 }
 0x15b   : > { %1190 = vst.msk [vmem:[%s2163_s8 + $0x34] sm:$0xf] %vm1176_vm1, %v1501_v37  ;;  %1222 = vst.msk [vmem:[%s2163_s8 + $0xb4] sm:$0xf] %vm1176_vm1, %v1533_v38  ;;  %v666_v45 = vadd.f32 %v2151_v36, %v665_v43  ;;  %v794_v46 = vadd.f32 %v2151_v36, %v793_v44  ;;  %v1616_v47 = vpop.f32.mrb[18].mxu0  ;;  %v1648_v48 = vpop.f32.mrb[18].mxu1 }
 0x15c   : > { %v874_v49 = vmax.f32 %v674_v41, 0.0  ;;  %v906_v50 = vmax.f32 %v802_v42, 0.0  ;;  %v677_v51 = vadd.f32 %v1616_v47, %v2151_v36  ;;  %v805_v52 = vadd.f32 %v1648_v48, %v2151_v36  ;;  %v668_v53 = vpop.f32.mrb[19].mxu0  ;;  %v796_v54 = vpop.f32.mrb[19].mxu1 }
 0x15d   : > { %v872_v55 = vmax.f32 %v666_v45, 0.0  ;;  %v904_v56 = vmax.f32 %v794_v46, 0.0  ;;  %v669_v57 = vadd.f32 %v2151_v36, %v668_v53  ;;  %v797_v58 = vadd.f32 %v2151_v36, %v796_v54 }
 0x15e   : > { %v1506_v59 = vpack.c.bf16 %v874_v49, %v874_v49  ;;  %v1538_v60 = vpack.c.bf16 %v906_v50, %v906_v50  ;;  %v875_v61 = vmax.f32 %v677_v51, 0.0  ;;  %v907_v62 = vmax.f32 %v805_v52, 0.0 }
 0x15f   : > { %v1504_v63 = vpack.c.bf16 %v872_v55, %v872_v55  ;;  %v1536_v0 = vpack.c.bf16 %v904_v56, %v904_v56  ;;  %v873_v1 = vmax.f32 %v669_v57, 0.0  ;;  %v905_v2 = vmax.f32 %v797_v58, 0.0 }
 0x160   : > { %1195 = vst.msk [vmem:[%s2163_s8 + $0x48] sm:$0xf] %vm1176_vm1, %v1506_v59  ;;  %1227 = vst.msk [vmem:[%s2163_s8 + $0xc8] sm:$0xf] %vm1176_vm1, %v1538_v60  ;;  %v1507_v3 = vpack.c.bf16 %v875_v61, %v875_v61  ;;  %v1539_v4 = vpack.c.bf16 %v907_v62, %v907_v62 }
 0x161   : > { %1193 = vst.msk [vmem:[%s2163_s8 + $0x40] sm:$0xf] %vm1176_vm1, %v1504_v63  ;;  %1225 = vst.msk [vmem:[%s2163_s8 + $0xc0] sm:$0xf] %vm1176_vm1, %v1536_v0  ;;  %v1505_v5 = vpack.c.bf16 %v873_v1, %v873_v1  ;;  %v1537_v6 = vpack.c.bf16 %v905_v2, %v905_v2  ;;  %v1619_v7 = vpop.f32.mrb[20].mxu0  ;;  %v1651_v8 = vpop.f32.mrb[20].mxu1 }
 0x162   : > { %1196 = vst.msk [vmem:[%s2163_s8 + $0x4c] sm:$0xf] %vm1176_vm1, %v1507_v3  ;;  %1228 = vst.msk [vmem:[%s2163_s8 + $0xcc] sm:$0xf] %vm1176_vm1, %v1539_v4  ;;  %v690_v9 = vadd.f32 %v1619_v7, %v2151_v36  ;;  %v818_v10 = vadd.f32 %v1651_v8, %v2151_v36  ;;  %v681_v11 = vpop.f32.mrb[21].mxu0  ;;  %v809_v12 = vpop.f32.mrb[21].mxu1 }
 0x163   : > { %1194 = vst.msk [vmem:[%s2163_s8 + $0x44] sm:$0xf] %vm1176_vm1, %v1505_v5  ;;  %1226 = vst.msk [vmem:[%s2163_s8 + $0xc4] sm:$0xf] %vm1176_vm1, %v1537_v6  ;;  %v682_v13 = vadd.f32 %v2151_v36, %v681_v11  ;;  %v810_v14 = vadd.f32 %v2151_v36, %v809_v12  ;;  %v1620_v15 = vpop.f32.mrb[22].mxu0  ;;  %v1652_v16 = vpop.f32.mrb[22].mxu1 }
 0x164   : > { %v878_v17 = vmax.f32 %v690_v9, 0.0  ;;  %v910_v18 = vmax.f32 %v818_v10, 0.0  ;;  %v693_v19 = vadd.f32 %v1620_v15, %v2151_v36  ;;  %v821_v20 = vadd.f32 %v1652_v16, %v2151_v36  ;;  %v684_v21 = vpop.f32.mrb[23].mxu0  ;;  %v812_v22 = vpop.f32.mrb[23].mxu1 }
 0x165   : > { %v876_v23 = vmax.f32 %v682_v13, 0.0  ;;  %v908_v24 = vmax.f32 %v810_v14, 0.0  ;;  %v685_v25 = vadd.f32 %v2151_v36, %v684_v21  ;;  %v813_v26 = vadd.f32 %v2151_v36, %v812_v22 }
 0x166   : > { %v1510_v27 = vpack.c.bf16 %v878_v17, %v878_v17  ;;  %v1542_v28 = vpack.c.bf16 %v910_v18, %v910_v18  ;;  %v879_v29 = vmax.f32 %v693_v19, 0.0  ;;  %v911_v30 = vmax.f32 %v821_v20, 0.0 }
 0x167   : > { %v1508_v31 = vpack.c.bf16 %v876_v23, %v876_v23  ;;  %v1540_v32 = vpack.c.bf16 %v908_v24, %v908_v24  ;;  %v877_v33 = vmax.f32 %v685_v25, 0.0  ;;  %v909_v34 = vmax.f32 %v813_v26, 0.0 }
 0x168   : > { %1199 = vst.msk [vmem:[%s2163_s8 + $0x58] sm:$0xf] %vm1176_vm1, %v1510_v27  ;;  %1231 = vst.msk [vmem:[%s2163_s8 + $0xd8] sm:$0xf] %vm1176_vm1, %v1542_v28  ;;  %v1511_v35 = vpack.c.bf16 %v879_v29, %v879_v29  ;;  %v1543_v37 = vpack.c.bf16 %v911_v30, %v911_v30 }
 0x169   : > { %1197 = vst.msk [vmem:[%s2163_s8 + $0x50] sm:$0xf] %vm1176_vm1, %v1508_v31  ;;  %1229 = vst.msk [vmem:[%s2163_s8 + $0xd0] sm:$0xf] %vm1176_vm1, %v1540_v32  ;;  %v1509_v38 = vpack.c.bf16 %v877_v33, %v877_v33  ;;  %v1541_v39 = vpack.c.bf16 %v909_v34, %v909_v34  ;;  %v1623_v40 = vpop.f32.mrb[24].mxu0  ;;  %v1655_v41 = vpop.f32.mrb[24].mxu1 }
 0x16a   : > { %1200 = vst.msk [vmem:[%s2163_s8 + $0x5c] sm:$0xf] %vm1176_vm1, %v1511_v35  ;;  %1232 = vst.msk [vmem:[%s2163_s8 + $0xdc] sm:$0xf] %vm1176_vm1, %v1543_v37  ;;  %v706_v42 = vadd.f32 %v1623_v40, %v2151_v36  ;;  %v834_v43 = vadd.f32 %v1655_v41, %v2151_v36  ;;  %v697_v44 = vpop.f32.mrb[25].mxu0  ;;  %v825_v45 = vpop.f32.mrb[25].mxu1 }
 0x16b   : > { %1198 = vst.msk [vmem:[%s2163_s8 + $0x54] sm:$0xf] %vm1176_vm1, %v1509_v38  ;;  %1230 = vst.msk [vmem:[%s2163_s8 + $0xd4] sm:$0xf] %vm1176_vm1, %v1541_v39  ;;  %v698_v46 = vadd.f32 %v2151_v36, %v697_v44  ;;  %v826_v47 = vadd.f32 %v2151_v36, %v825_v45  ;;  %v1624_v48 = vpop.f32.mrb[26].mxu0  ;;  %v1656_v49 = vpop.f32.mrb[26].mxu1 }
 0x16c   : > { %v882_v50 = vmax.f32 %v706_v42, 0.0  ;;  %v914_v51 = vmax.f32 %v834_v43, 0.0  ;;  %v709_v52 = vadd.f32 %v1624_v48, %v2151_v36  ;;  %v837_v53 = vadd.f32 %v1656_v49, %v2151_v36  ;;  %v700_v54 = vpop.f32.mrb[27].mxu0  ;;  %v828_v55 = vpop.f32.mrb[27].mxu1 }
 0x16d   : > { %v880_v56 = vmax.f32 %v698_v46, 0.0  ;;  %v912_v57 = vmax.f32 %v826_v47, 0.0  ;;  %v701_v58 = vadd.f32 %v2151_v36, %v700_v54  ;;  %v829_v59 = vadd.f32 %v2151_v36, %v828_v55 }
 0x16e   : > { %v1514_v60 = vpack.c.bf16 %v882_v50, %v882_v50  ;;  %v1546_v61 = vpack.c.bf16 %v914_v51, %v914_v51  ;;  %v883_v62 = vmax.f32 %v709_v52, 0.0  ;;  %v915_v63 = vmax.f32 %v837_v53, 0.0 }
 0x16f   : > { %v1512_v0 = vpack.c.bf16 %v880_v56, %v880_v56  ;;  %v1544_v1 = vpack.c.bf16 %v912_v57, %v912_v57  ;;  %v881_v2 = vmax.f32 %v701_v58, 0.0  ;;  %v913_v3 = vmax.f32 %v829_v59, 0.0 }
 0x170   : > { %1203 = vst.msk [vmem:[%s2163_s8 + $0x68] sm:$0xf] %vm1176_vm1, %v1514_v60  ;;  %1235 = vst.msk [vmem:[%s2163_s8 + $0xe8] sm:$0xf] %vm1176_vm1, %v1546_v61  ;;  %v1515_v4 = vpack.c.bf16 %v883_v62, %v883_v62  ;;  %v1547_v5 = vpack.c.bf16 %v915_v63, %v915_v63 }
 0x171   : > { %1201 = vst.msk [vmem:[%s2163_s8 + $0x60] sm:$0xf] %vm1176_vm1, %v1512_v0  ;;  %1233 = vst.msk [vmem:[%s2163_s8 + $0xe0] sm:$0xf] %vm1176_vm1, %v1544_v1  ;;  %v1513_v6 = vpack.c.bf16 %v881_v2, %v881_v2  ;;  %v1545_v7 = vpack.c.bf16 %v913_v3, %v913_v3  ;;  %v1627_v8 = vpop.f32.mrb[28].mxu0  ;;  %v1659_v9 = vpop.f32.mrb[28].mxu1 }
 0x172   : > { %1204 = vst.msk [vmem:[%s2163_s8 + $0x6c] sm:$0xf] %vm1176_vm1, %v1515_v4  ;;  %1236 = vst.msk [vmem:[%s2163_s8 + $0xec] sm:$0xf] %vm1176_vm1, %v1547_v5  ;;  %v722_v10 = vadd.f32 %v1627_v8, %v2151_v36  ;;  %v850_v11 = vadd.f32 %v1659_v9, %v2151_v36  ;;  %v713_v12 = vpop.f32.mrb[29].mxu0  ;;  %v841_v13 = vpop.f32.mrb[29].mxu1 }
 0x173   : > { %1202 = vst.msk [vmem:[%s2163_s8 + $0x64] sm:$0xf] %vm1176_vm1, %v1513_v6  ;;  %1234 = vst.msk [vmem:[%s2163_s8 + $0xe4] sm:$0xf] %vm1176_vm1, %v1545_v7  ;;  %v714_v14 = vadd.f32 %v2151_v36, %v713_v12  ;;  %v842_v15 = vadd.f32 %v2151_v36, %v841_v13  ;;  %v1628_v16 = vpop.f32.mrb[30].mxu0  ;;  %v1660_v17 = vpop.f32.mrb[30].mxu1 }
 0x174   : > { %v886_v18 = vmax.f32 %v722_v10, 0.0  ;;  %v918_v19 = vmax.f32 %v850_v11, 0.0  ;;  %v725_v20 = vadd.f32 %v1628_v16, %v2151_v36  ;;  %v853_v21 = vadd.f32 %v1660_v17, %v2151_v36  ;;  %v716_v22 = vpop.f32.mrb[31].mxu0  ;;  %v844_v23 = vpop.f32.mrb[31].mxu1 }
 0x175   : > { %v884_v24 = vmax.f32 %v714_v14, 0.0  ;;  %v916_v25 = vmax.f32 %v842_v15, 0.0  ;;  %v717_v26 = vadd.f32 %v2151_v36, %v716_v22  ;;  %v845_v27 = vadd.f32 %v2151_v36, %v844_v23 }
 0x176   : > { %v1518_v28 = vpack.c.bf16 %v886_v18, %v886_v18  ;;  %v1550_v29 = vpack.c.bf16 %v918_v19, %v918_v19  ;;  %v887_v30 = vmax.f32 %v725_v20, 0.0  ;;  %v919_v31 = vmax.f32 %v853_v21, 0.0 }
 0x177   : > { %v1516_v32 = vpack.c.bf16 %v884_v24, %v884_v24  ;;  %v1548_v33 = vpack.c.bf16 %v916_v25, %v916_v25  ;;  %v885_v34 = vmax.f32 %v717_v26, 0.0  ;;  %v917_v35 = vmax.f32 %v845_v27, 0.0 }
 0x178   : > { %1207 = vst.msk [vmem:[%s2163_s8 + $0x78] sm:$0xf] %vm1176_vm1, %v1518_v28  ;;  %1239 = vst.msk [vmem:[%s2163_s8 + $0xf8] sm:$0xf] %vm1176_vm1, %v1550_v29  ;;  %v1519_v36 = vpack.c.bf16 %v887_v30, %v887_v30  ;;  %v1551_v37 = vpack.c.bf16 %v919_v31, %v919_v31 }
 0x179   : > { %1205 = vst.msk [vmem:[%s2163_s8 + $0x70] sm:$0xf] %vm1176_vm1, %v1516_v32  ;;  %1237 = vst.msk [vmem:[%s2163_s8 + $0xf0] sm:$0xf] %vm1176_vm1, %v1548_v33  ;;  %v1517_v38 = vpack.c.bf16 %v885_v34, %v885_v34  ;;  %v1549_v39 = vpack.c.bf16 %v917_v35, %v917_v35 }
 0x17a   : > { %1208 = vst.msk [vmem:[%s2163_s8 + $0x7c] sm:$0xf] %vm1176_vm1, %v1519_v36  ;;  %1240 = vst.msk [vmem:[%s2163_s8 + $0xfc] sm:$0xf] %vm1176_vm1, %v1551_v37 }
 0x17b   : > { %1206 = vst.msk [vmem:[%s2163_s8 + $0x74] sm:$0xf] %vm1176_vm1, %v1517_v38  ;;  %1238 = vst.msk [vmem:[%s2163_s8 + $0xf4] sm:$0xf] %vm1176_vm1, %v1549_v39 }
 0x17c   : > { %1837 = shalt.err (!%p1834_p7)
}
 0x17d   : > { %s1838_s30 = scalar_lea.hbm %s2342_s5, 4096  ;;  %s1842_s10 = scalar_lea.hbm %s2403_s3, 8192 }
 0x17e   : > { %p1839_p9 = scmp.ne.s32.totalorder %s2342_s5, %s1838_s30  ;;  %p1843_p5 = scmp.lt.u32.totalorder %s2342_s5, %s2403_s3 }
 0x17f   : > { %p1844_p11 = scmp.lt.u32.totalorder %s1842_s10, %s1838_s30  ;;  %p1846_p4 = scmp.lt.u32.totalorder %s1838_s30, %s2342_s5 }
 0x180   : > { %p1840_p1 = pnand %p1839_p9, %p2017_p12 }
 0x181   : > { %p1845_p2 = por %p1844_p11, %p1843_p5 }
 0x182   : > { %p1841_p0 = pneg %p1840_p1 }
 0x183   : > { %p1847_p6 = por %p1846_p4, %p1845_p2 }
 0x185   : > { %p1848_p8 = pnand %p1847_p6, %p1841_p0 }
 0x187   : > { %1851 = shalt.err (!%p1848_p8)
}
 0x188   : > { %s1901_s20 = smov 64   ;;  %s1902_s8 = smov 4  }
 0x189   : > { %1675 = dma.vmem_to_hbm [thread:$0]  (%p2017_p12), %s2344_s4, 4096, %s2342_s5, %s1242_s11, %s1901_s20, %s1901_s20, %s1902_s8  }
 0x18a PF: > { %s1270_s9 = sand.u32 1, %s1882_s12   ;;  %p2418_p10 = scmp.ne.s32.totalorder %s2408_s19, 0 }
 0x18b   : > { %p2419_p13 = scmp.ge.s32.totalorder %s1894_s15, 2  ;;  %s1271_s16 = scalar_lea.sflag [#allocation4], %s1270_s9 }
 0x18d   : > { %p1686_p3 = pnand %p2419_p13, %p2418_p10 }
 0x18f   : > { %1877 = dma.done.wait (!%p1686_p3), %s1271_s16, 4096  }
 0x190   : > { %1879 = vsyncadd (!%p1686_p3), %s1271_s16, 4294963200  ;;  %p17_p7 = scmp.ge.s32.totalorder %s1979_s24, 4   ;;  %s2420_s12 = smov %s1886_s13 }
 0x191   : > { %s2421_s13 = smov %s1890_s14  ;;  %s2422_s14 = smov %s2013_s17 }
 0x192   : > { %s2423_s15 = smov %s1979_s24  ;;  %19 = sbr.rel (!%p17_p7) target bundleno = 6 (0x6), region = 81 }
 0x199   :  { %1276 = vsyncpa [#allocation3], 1 }
 0x19a   :  { %1278 = vsyncpa [#allocation3 + $0x1], 1 }
 0x19b   :  { %1279 = vsyncpa [#allocation6], 1 }
 0x19c   :  { %1280 = vsyncpa [#allocation4], 1 }
 0x19d   :  { %1282 = vsyncpa [#allocation4 + $0x1], 1 }

</bundles_post_ra>
